<compile_context>
chip_gen: v6e
topology: v6e:2x2x1
jax: 0.10.0
libtpu: 0.0.40
codegen_flags: <defaults>
</compile_context>

<pallas_src>
import math

import jax
import jax.numpy as jnp
from jax import lax
from jax.experimental import pallas as pl
from jax.experimental.pallas import tpu as pltpu


def _fold_bn(gamma, beta, mean, var, eps=1e-5):
    scale = gamma / jnp.sqrt(var + eps)
    shift = beta - mean * scale
    return scale, shift


def _padded_channels(c, w, lane=128):
    """Smallest c' >= c such that w * c' is a multiple of `lane`."""
    step = lane // math.gcd(w, lane)
    return -(-c // step) * step


# ---------------------------------------------------------------------------
# Fused forward: NCHW in / NCHW out, row-flattened lane-dense NHWC internally.
# ---------------------------------------------------------------------------
def upsampled_part_forward(x1_nchw, x2_nchw, params):
    f32 = jnp.float32
    N, C_in, H1, W1 = x1_nchw.shape
    _, C_skip, H2, W2 = x2_nchw.shape
    C_out = params["up_w"].shape[1]
    assert params["c1_w"].shape[1] == C_skip + C_out

    dY = H2 - 2 * H1
    dX = W2 - 2 * W1
    assert dY >= 0 and dX >= 0      # TODO(synk): cropping (negative pad) unsupported
    dYt, dXt = dY // 2, dX // 2     # static F.pad offsets (top/left)

    # Internal channel padding so every lane width is a multiple of 128.
    Cp_s = _padded_channels(C_skip, W2)
    Cp_o = _padded_channels(C_out, W2)
    WCs = W2 * Cp_s                 # skip-row lane width (128 here)
    WCu = W2 * Cp_o                 # up / output row lane width (128 here)
    K0 = W1 * C_in
    K_up = 2 * K0                   # parity-expanded deconv contraction depth

    # ---- activations -> row-flattened lane-dense layouts --------------------
    # x2: NCHW -> NHWC -> channel-pad -> (N, H2, W2*Cp_s), lanes = (x, c).
    x2r = jnp.transpose(x2_nchw, (0, 2, 3, 1)).astype(f32)
    x2r = jnp.pad(x2r, ((0, 0), (0, 0), (0, 0), (0, Cp_s - C_skip)))
    x2r = x2r.reshape(N, H2, WCs)

    # x1: parity-expanded rows:  row 2i = [x1_i | 0],  row 2i+1 = [0 | x1_i].
    # With the parity-stacked deconv weight below, the in-kernel deconv is one
    # dense matmul whose output rows are already interleaved in spatial order.
    x1f = jnp.transpose(x1_nchw, (0, 2, 3, 1)).astype(f32).reshape(N, H1, 1, K0)
    z = jnp.zeros_like(x1f)
    x1e = jnp.concatenate(
        [jnp.concatenate([x1f, z], axis=-1), jnp.concatenate([z, x1f], axis=-1)],
        axis=2).reshape(N, 2 * H1, K_up)

    # =========================================================================
    # Structured-weight construction (tiny, one-time; precompute in real use).
    # =========================================================================
    xcols = jnp.arange(W2)

    # ConvTranspose2d(2,2): (2*W1*C_in, W2*Cp_o) parity-stacked matrix; the
    # horizontal F.pad columns and pad channels are zero columns.
    up_w = jnp.pad(params["up_w"].astype(f32),
                   ((0, 0), (0, Cp_o - C_out), (0, 0), (0, 0)))     # (Cin,Cp_o,2,2)
    tgt = dXt + 2 * jnp.arange(W1)[:, None] + jnp.arange(2)[None, :]          # (W1, dj)
    ind = (xcols[None, None, :] == tgt[:, :, None]).astype(f32)               # (W1, dj, W2)
    wup = jnp.einsum("jax,coia->ijcxo", ind, up_w).reshape(K_up, WCu)

    colmask = ((xcols >= dXt) & (xcols < dXt + 2 * W1)).astype(f32)           # (W2,)
    up_b = jnp.pad(params["up_b"].astype(f32), (0, Cp_o - C_out))
    bup = (colmask[:, None] * up_b[None, :]).reshape(1, WCu)

    # 3x3 convs: 3 row-shifted block-sparse matrices; horizontal taps, the
    # padding=1 columns and the channel padding are folded into the matrices.
    dxr = jnp.arange(3)
    ind2 = (xcols[None, None, :] ==
            (xcols[:, None, None] + dxr[None, :, None] - 1)).astype(f32)      # (xo,dx,xi)

    def conv3_mats(w_oihw, cin_pad):
        cout, cb = w_oihw.shape[0], w_oihw.shape[1]
        w_p = jnp.pad(w_oihw.astype(f32),
                      ((0, Cp_o - cout), (0, cin_pad - cb), (0, 0), (0, 0)))
        m = jnp.einsum("xdi,ocyd->yicxo", ind2, w_p)
        return m.reshape(3, W2 * cin_pad, WCu)

    c1_w = params["c1_w"]
    w1 = jnp.concatenate(
        [conv3_mats(c1_w[:, :C_skip], Cp_s),       # skip (x2) rows
         conv3_mats(c1_w[:, C_skip:], Cp_o)],      # upsampled rows
        axis=1)                                    # (3, WCs+WCu, WCu)
    w2 = conv3_mats(params["c2_w"], Cp_o)          # (3, WCu, WCu)

    def bn_lanes(g, b, m, v):
        s, sh = _fold_bn(g, b, m, v)
        s = jnp.pad(s.astype(f32), (0, Cp_o - C_out))
        sh = jnp.pad(sh.astype(f32), (0, Cp_o - C_out))
        return jnp.stack([jnp.tile(s, W2), jnp.tile(sh, W2)])     # (2, WCu)

    bn1 = bn_lanes(params["g1"], params["b1"], params["m1"], params["v1"])
    bn2 = bn_lanes(params["g2"], params["b2"], params["m2"], params["v2"])

    # =========================================================================
    # Fused kernel: one grid step per batch element, everything in VMEM.
    # =========================================================================
    up_row0 = 1 + dYt
    up_row1 = up_row0 + 2 * H1
    zero_bot = 1 + H2 - up_row1                  # bottom F.pad rows (dY - dYt)

    def kernel(x1_ref, x2_ref, wup_ref, bup_ref, w1_ref, bn1_ref, w2_ref,
               bn2_ref, o_ref, comb, h1p):
        # --- zero only the never-written pad rows (no full-scratch memsets) --
        comb[0:1, :] = jnp.zeros((1, WCs + WCu), jnp.float32)
        comb[H2 + 1:H2 + 2, :] = jnp.zeros((1, WCs + WCu), jnp.float32)
        h1p[0:1, :] = jnp.zeros((1, WCu), jnp.float32)
        h1p[H2 + 1:H2 + 2, :] = jnp.zeros((1, WCu), jnp.float32)
        if dYt > 0:          # top F.pad rows of the upsampled lanes
            comb[1:1 + dYt, WCs:] = jnp.zeros((dYt, WCu), jnp.float32)
        if zero_bot > 0:     # bottom F.pad rows of the upsampled lanes
            comb[up_row1:1 + H2, WCs:] = jnp.zeros((zero_bot, WCu), jnp.float32)

        # --- skip connection: one dense lane-aligned store -------------------
        comb[1:1 + H2, 0:WCs] = x2_ref[0]

        # --- ConvTranspose2d(2,2) + bias + F.pad: ONE matmul, ONE dense store -
        u = jnp.dot(x1_ref[0], wup_ref[...],
                    preferred_element_type=jnp.float32) + bup_ref[...]
        comb[up_row0:up_row1, WCs:WCs + WCu] = u

        # --- Conv1 (3x3, merged skip+up, K=WCs+WCu) + BN + ReLU ---------------
        acc = jnp.zeros((H2, WCu), jnp.float32)
        for dy in range(3):
            acc += jnp.dot(comb[dy:dy + H2, :], w1_ref[dy],
                           preferred_element_type=jnp.float32)
        h1p[1:1 + H2, :] = jnp.maximum(acc * bn1_ref[0:1, :] + bn1_ref[1:2, :], 0.0)

        # --- Conv2 (3x3) + BN + ReLU ------------------------------------------
        acc2 = jnp.zeros((H2, WCu), jnp.float32)
        for dy in range(3):
            acc2 += jnp.dot(h1p[dy:dy + H2, :], w2_ref[dy],
                            preferred_element_type=jnp.float32)
        y = jnp.maximum(acc2 * bn2_ref[0:1, :] + bn2_ref[1:2, :], 0.0)
        o_ref[...] = y.reshape(1, H2, WCu)

    out = pl.pallas_call(
        kernel,
        out_shape=jax.ShapeDtypeStruct((N, H2, WCu), jnp.float32),
        grid=(N,),
        in_specs=[
            pl.BlockSpec((1, 2 * H1, K_up), lambda n: (n, 0, 0)),
            pl.BlockSpec((1, H2, WCs), lambda n: (n, 0, 0)),
            pl.BlockSpec((K_up, WCu), lambda n: (0, 0)),
            pl.BlockSpec((1, WCu), lambda n: (0, 0)),
            pl.BlockSpec((3, WCs + WCu, WCu), lambda n: (0, 0, 0)),
            pl.BlockSpec((2, WCu), lambda n: (0, 0)),
            pl.BlockSpec((3, WCu, WCu), lambda n: (0, 0, 0)),
            pl.BlockSpec((2, WCu), lambda n: (0, 0)),
        ],
        out_specs=pl.BlockSpec((1, H2, WCu), lambda n: (n, 0, 0)),
        scratch_shapes=[
            pltpu.VMEM((H2 + 2, WCs + WCu), jnp.float32),  # padded [skip | up] rows
            pltpu.VMEM((H2 + 2, WCu), jnp.float32),        # padded conv1 output rows
        ],
        compiler_params=pltpu.CompilerParams(dimension_semantics=("parallel",)),
    )(x1e, x2r, wup, bup, w1, bn1, w2, bn2)

    out = out.reshape(N, H2, W2, Cp_o)[..., :C_out]        # drop channel padding
    return jnp.transpose(out, (0, 3, 1, 2))                # back to NCHW


# ---------------------------------------------------------------------------
# Pure-JAX reference (lax convolutions) for a sanity check.
# ---------------------------------------------------------------------------
def reference_forward(x1_nchw, x2_nchw, p):
    x1 = jnp.transpose(x1_nchw, (0, 2, 3, 1)).astype(jnp.float32)
    x2 = jnp.transpose(x2_nchw, (0, 2, 3, 1)).astype(jnp.float32)

    wt = p["up_w"]                                           # (Cin, Cout, 2, 2)
    rhs = jnp.transpose(wt[:, :, ::-1, ::-1], (2, 3, 0, 1))  # HWIO
    up = lax.conv_general_dilated(
        x1, rhs, window_strides=(1, 1), padding=((1, 1), (1, 1)),
        lhs_dilation=(2, 2), dimension_numbers=("NHWC", "HWIO", "NHWC"),
        precision=lax.Precision.HIGHEST) + p["up_b"]

    dY = x2.shape[1] - up.shape[1]
    dX = x2.shape[2] - up.shape[2]
    up = jnp.pad(up, ((0, 0), (dY // 2, dY - dY // 2),
                      (dX // 2, dX - dX // 2), (0, 0)))
    x = jnp.concatenate([x2, up], axis=-1)

    def cbr(x, w_oihw, gamma, beta, mean, var, eps=1e-5):
        rhs = jnp.transpose(w_oihw, (2, 3, 1, 0))            # HWIO
        y = lax.conv_general_dilated(
            x, rhs, (1, 1), ((1, 1), (1, 1)),
            dimension_numbers=("NHWC", "HWIO", "NHWC"),
            precision=lax.Precision.HIGHEST)
        y = (y - mean) / jnp.sqrt(var + eps) * gamma + beta
        return jnp.maximum(y, 0.0)

    x = cbr(x, p["c1_w"], p["g1"], p["b1"], p["m1"], p["v1"])
    x = cbr(x, p["c2_w"], p["g2"], p["b2"], p["m2"], p["v2"])
    return jnp.transpose(x, (0, 3, 1, 2))


if __name__ == "__main__":
    # upsampledPart(channel_in=8, channel_out=4): x1 has 8 channels at half
    # resolution, x2 (skip connection) has 4 channels at full resolution.
    C_in, C_out = 8, 4
    N, H1, W1 = 2, 8, 8
    H2, W2 = 16, 16

    key = jax.random.PRNGKey(0)
    ks = jax.random.split(key, 16)
    params = {
        "up_w": 0.2 * jax.random.normal(ks[0], (C_in, C_out, 2, 2), jnp.float32),
        "up_b": 0.1 * jax.random.normal(ks[1], (C_out,), jnp.float32),
        "c1_w": 0.2 * jax.random.normal(ks[2], (C_out, C_in, 3, 3), jnp.float32),
        "g1": 1.0 + 0.1 * jax.random.normal(ks[3], (C_out,), jnp.float32),
        "b1": 0.1 * jax.random.normal(ks[4], (C_out,), jnp.float32),
        "m1": 0.05 * jax.random.normal(ks[5], (C_out,), jnp.float32),
        "v1": jax.random.uniform(ks[6], (C_out,), jnp.float32, 0.5, 1.5),
        "c2_w": 0.2 * jax.random.normal(ks[7], (C_out, C_out, 3, 3), jnp.float32),
        "g2": 1.0 + 0.1 * jax.random.normal(ks[8], (C_out,), jnp.float32),
        "b2": 0.1 * jax.random.normal(ks[9], (C_out,), jnp.float32),
        "m2": 0.05 * jax.random.normal(ks[10], (C_out,), jnp.float32),
        "v2": jax.random.uniform(ks[11], (C_out,), jnp.float32, 0.5, 1.5),
    }
    x1 = jax.random.normal(ks[12], (N, C_in, H1, W1), jnp.float32)
    x2 = jax.random.normal(ks[13], (N, C_out, H2, W2), jnp.float32)

    out = jax.jit(upsampled_part_forward)(x1, x2, params)
    out = jax.block_until_ready(out)

    assert out.shape == (N, C_out, H2, W2), out.shape
    ref = reference_forward(x1, x2, params)
    # Tolerance covers the MXU's default f32 matmul path vs. HIGHEST-precision
    # lax reference.
    max_err = float(jnp.max(jnp.abs(out - ref)))
    assert jnp.allclose(out, ref, rtol=2e-2, atol=2e-2), max_err

    print("KERNEL_OK")
</pallas_src>

<mosaic_0001>
module attributes {stable_mosaic.version = 11 : i64} {
  func.func @kernel(%arg0: i32, %arg1: memref<1x16x128xf32, #tpu.memory_space<vmem>>, %arg2: memref<1x16x128xf32, #tpu.memory_space<vmem>>, %arg3: memref<128x128xf32, #tpu.memory_space<vmem>>, %arg4: memref<1x128xf32, #tpu.memory_space<vmem>>, %arg5: memref<3x256x128xf32, #tpu.memory_space<vmem>>, %arg6: memref<2x128xf32, #tpu.memory_space<vmem>>, %arg7: memref<3x128x128xf32, #tpu.memory_space<vmem>>, %arg8: memref<2x128xf32, #tpu.memory_space<vmem>>, %arg9: memref<1x16x128xf32, #tpu.memory_space<vmem>>, %arg10: memref<18x256xf32, #tpu.memory_space<vmem>>, %arg11: memref<18x128xf32, #tpu.memory_space<vmem>>) attributes {dimension_semantics = [#tpu.dimension_semantics<parallel>], iteration_bounds = array<i64: 2>, scalar_prefetch = 0 : i64, scratch_operands = 2 : i64, tpu.core_type = #tpu.core_type<tc>, window_params = [{transform_indices = @transform_0, window_bounds = array<i64: 1, 16, 128>}, {transform_indices = @transform_1, window_bounds = array<i64: 1, 16, 128>}, {pipeline_mode = #tpu.pipeline_mode<synchronous>, transform_indices = @transform_2, window_bounds = array<i64: 128, 128>}, {pipeline_mode = #tpu.pipeline_mode<synchronous>, transform_indices = @transform_3, window_bounds = array<i64: 1, 128>}, {pipeline_mode = #tpu.pipeline_mode<synchronous>, transform_indices = @transform_4, window_bounds = array<i64: 3, 256, 128>}, {pipeline_mode = #tpu.pipeline_mode<synchronous>, transform_indices = @transform_5, window_bounds = array<i64: 2, 128>}, {pipeline_mode = #tpu.pipeline_mode<synchronous>, transform_indices = @transform_6, window_bounds = array<i64: 3, 128, 128>}, {pipeline_mode = #tpu.pipeline_mode<synchronous>, transform_indices = @transform_7, window_bounds = array<i64: 2, 128>}, {transform_indices = @transform_8, window_bounds = array<i64: 1, 16, 128>}]} {
    %cst = arith.constant 0.000000e+00 : f32
    %0 = vector.broadcast %cst : f32 to vector<1x256xf32>
    %c0 = arith.constant 0 : index
    %c0_0 = arith.constant 0 : index
    %1 = vector.load %arg10[%c0, %c0_0] : memref<18x256xf32, #tpu.memory_space<vmem>>, vector<1x256xf32>
    tpu.vector_store %arg10[%c0, %c0_0], %0 {strides = array<i32>} : memref<18x256xf32, #tpu.memory_space<vmem>>, vector<1x256xf32>,
    %cst_1 = arith.constant 0.000000e+00 : f32
    %2 = vector.broadcast %cst_1 : f32 to vector<1x256xf32>
    %c17 = arith.constant 17 : index
    %c0_2 = arith.constant 0 : index
    %3 = vector.load %arg10[%c17, %c0_2] : memref<18x256xf32, #tpu.memory_space<vmem>>, vector<1x256xf32>
    tpu.vector_store %arg10[%c17, %c0_2], %2 {strides = array<i32>} : memref<18x256xf32, #tpu.memory_space<vmem>>, vector<1x256xf32>,
    %cst_3 = arith.constant 0.000000e+00 : f32
    %4 = vector.broadcast %cst_3 : f32 to vector<1x128xf32>
    %c0_4 = arith.constant 0 : index
    %c0_5 = arith.constant 0 : index
    %5 = vector.load %arg11[%c0_4, %c0_5] : memref<18x128xf32, #tpu.memory_space<vmem>>, vector<1x128xf32>
    tpu.vector_store %arg11[%c0_4, %c0_5], %4 {strides = array<i32>} : memref<18x128xf32, #tpu.memory_space<vmem>>, vector<1x128xf32>,
    %cst_6 = arith.constant 0.000000e+00 : f32
    %6 = vector.broadcast %cst_6 : f32 to vector<1x128xf32>
    %c17_7 = arith.constant 17 : index
    %c0_8 = arith.constant 0 : index
    %7 = vector.load %arg11[%c17_7, %c0_8] : memref<18x128xf32, #tpu.memory_space<vmem>>, vector<1x128xf32>
    tpu.vector_store %arg11[%c17_7, %c0_8], %6 {strides = array<i32>} : memref<18x128xf32, #tpu.memory_space<vmem>>, vector<1x128xf32>,
    %c0_9 = arith.constant 0 : index
    %c0_10 = arith.constant 0 : index
    %c0_11 = arith.constant 0 : index
    %8 = vector.load %arg2[%c0_9, %c0_10, %c0_11] : memref<1x16x128xf32, #tpu.memory_space<vmem>>, vector<1x16x128xf32>
    %9 = vector.shape_cast %8 : vector<1x16x128xf32> to vector<16x128xf32>
    %c1 = arith.constant 1 : index
    %c0_12 = arith.constant 0 : index
    %10 = vector.load %arg10[%c1, %c0_12] : memref<18x256xf32, #tpu.memory_space<vmem>>, vector<16x128xf32>
    tpu.vector_store %arg10[%c1, %c0_12], %9 {strides = array<i32>} : memref<18x256xf32, #tpu.memory_space<vmem>>, vector<16x128xf32>,
    %c0_13 = arith.constant 0 : index
    %c0_14 = arith.constant 0 : index
    %c0_15 = arith.constant 0 : index
    %11 = vector.load %arg1[%c0_13, %c0_14, %c0_15] : memref<1x16x128xf32, #tpu.memory_space<vmem>>, vector<1x16x128xf32>
    %12 = vector.shape_cast %11 : vector<1x16x128xf32> to vector<16x128xf32>
    %c0_16 = arith.constant 0 : index
    %c0_17 = arith.constant 0 : index
    %13 = vector.load %arg3[%c0_16, %c0_17] : memref<128x128xf32, #tpu.memory_space<vmem>>, vector<128x128xf32>
    %cst_18 = arith.constant dense<0.000000e+00> : vector<16x128xf32>
    %14 = tpu.matmul %12, %13, %cst_18 {dimension_numbers = #tpu.dot_dimension_numbers<[1], [0], [0], [1], [0, 0, 1, 1], [], []>} : vector<16x128xf32>, vector<128x128xf32>, vector<16x128xf32> -> vector<16x128xf32>
    %c0_19 = arith.constant 0 : index
    %c0_20 = arith.constant 0 : index
    %15 = vector.load %arg4[%c0_19, %c0_20] : memref<1x128xf32, #tpu.memory_space<vmem>>, vector<1x128xf32>
    %16 = vector.broadcast %15 : vector<1x128xf32> to vector<16x128xf32>
    %17 = arith.addf %14, %16 : vector<16x128xf32>
    %c1_21 = arith.constant 1 : index
    %c128 = arith.constant 128 : index
    %18 = vector.load %arg10[%c1_21, %c128] : memref<18x256xf32, #tpu.memory_space<vmem>>, vector<16x128xf32>
    tpu.vector_store %arg10[%c1_21, %c128], %17 {strides = array<i32>} : memref<18x256xf32, #tpu.memory_space<vmem>>, vector<16x128xf32>,
    %cst_22 = arith.constant 0.000000e+00 : f32
    %19 = vector.broadcast %cst_22 : f32 to vector<16x128xf32>
    %c0_23 = arith.constant 0 : index
    %c0_24 = arith.constant 0 : index
    %20 = vector.load %arg10[%c0_23, %c0_24] : memref<18x256xf32, #tpu.memory_space<vmem>>, vector<16x256xf32>
    %c0_25 = arith.constant 0 : index
    %c0_26 = arith.constant 0 : index
    %c0_27 = arith.constant 0 : index
    %21 = vector.load %arg5[%c0_25, %c0_26, %c0_27] : memref<3x256x128xf32, #tpu.memory_space<vmem>>, vector<1x256x128xf32>
    %22 = vector.shape_cast %21 : vector<1x256x128xf32> to vector<256x128xf32>
    %cst_28 = arith.constant dense<0.000000e+00> : vector<16x128xf32>
    %23 = tpu.matmul %20, %22, %cst_28 {dimension_numbers = #tpu.dot_dimension_numbers<[1], [0], [0], [1], [0, 0, 1, 1], [], []>} : vector<16x256xf32>, vector<256x128xf32>, vector<16x128xf32> -> vector<16x128xf32>
    %24 = arith.addf %19, %23 : vector<16x128xf32>
    %c1_29 = arith.constant 1 : index
    %c0_30 = arith.constant 0 : index
    %25 = vector.load %arg10[%c1_29, %c0_30] : memref<18x256xf32, #tpu.memory_space<vmem>>, vector<16x256xf32>
    %c1_31 = arith.constant 1 : index
    %c0_32 = arith.constant 0 : index
    %c0_33 = arith.constant 0 : index
    %26 = vector.load %arg5[%c1_31, %c0_32, %c0_33] : memref<3x256x128xf32, #tpu.memory_space<vmem>>, vector<1x256x128xf32>
    %27 = vector.shape_cast %26 : vector<1x256x128xf32> to vector<256x128xf32>
    %cst_34 = arith.constant dense<0.000000e+00> : vector<16x128xf32>
    %28 = tpu.matmul %25, %27, %cst_34 {dimension_numbers = #tpu.dot_dimension_numbers<[1], [0], [0], [1], [0, 0, 1, 1], [], []>} : vector<16x256xf32>, vector<256x128xf32>, vector<16x128xf32> -> vector<16x128xf32>
    %29 = arith.addf %24, %28 : vector<16x128xf32>
    %c2 = arith.constant 2 : index
    %c0_35 = arith.constant 0 : index
    %30 = vector.load %arg10[%c2, %c0_35] : memref<18x256xf32, #tpu.memory_space<vmem>>, vector<16x256xf32>
    %c2_36 = arith.constant 2 : index
    %c0_37 = arith.constant 0 : index
    %c0_38 = arith.constant 0 : index
    %31 = vector.load %arg5[%c2_36, %c0_37, %c0_38] : memref<3x256x128xf32, #tpu.memory_space<vmem>>, vector<1x256x128xf32>
    %32 = vector.shape_cast %31 : vector<1x256x128xf32> to vector<256x128xf32>
    %cst_39 = arith.constant dense<0.000000e+00> : vector<16x128xf32>
    %33 = tpu.matmul %30, %32, %cst_39 {dimension_numbers = #tpu.dot_dimension_numbers<[1], [0], [0], [1], [0, 0, 1, 1], [], []>} : vector<16x256xf32>, vector<256x128xf32>, vector<16x128xf32> -> vector<16x128xf32>
    %34 = arith.addf %29, %33 : vector<16x128xf32>
    %c0_40 = arith.constant 0 : index
    %c0_41 = arith.constant 0 : index
    %35 = vector.load %arg6[%c0_40, %c0_41] : memref<2x128xf32, #tpu.memory_space<vmem>>, vector<1x128xf32>
    %36 = vector.broadcast %35 : vector<1x128xf32> to vector<16x128xf32>
    %37 = arith.mulf %34, %36 : vector<16x128xf32>
    %c1_42 = arith.constant 1 : index
    %c0_43 = arith.constant 0 : index
    %38 = vector.load %arg6[%c1_42, %c0_43] : memref<2x128xf32, #tpu.memory_space<vmem>>, vector<1x128xf32>
    %39 = vector.broadcast %38 : vector<1x128xf32> to vector<16x128xf32>
    %40 = arith.addf %37, %39 : vector<16x128xf32>
    %cst_44 = arith.constant 0.000000e+00 : f32
    %41 = vector.broadcast %cst_44 : f32 to vector<16x128xf32>
    %42 = arith.maximumf %40, %41 : vector<16x128xf32>
    %c1_45 = arith.constant 1 : index
    %c0_46 = arith.constant 0 : index
    %43 = vector.load %arg11[%c1_45, %c0_46] : memref<18x128xf32, #tpu.memory_space<vmem>>, vector<16x128xf32>
    tpu.vector_store %arg11[%c1_45, %c0_46], %42 {strides = array<i32>} : memref<18x128xf32, #tpu.memory_space<vmem>>, vector<16x128xf32>,
    %cst_47 = arith.constant 0.000000e+00 : f32
    %44 = vector.broadcast %cst_47 : f32 to vector<16x128xf32>
    %c0_48 = arith.constant 0 : index
    %c0_49 = arith.constant 0 : index
    %45 = vector.load %arg11[%c0_48, %c0_49] : memref<18x128xf32, #tpu.memory_space<vmem>>, vector<16x128xf32>
    %c0_50 = arith.constant 0 : index
    %c0_51 = arith.constant 0 : index
    %c0_52 = arith.constant 0 : index
    %46 = vector.load %arg7[%c0_50, %c0_51, %c0_52] : memref<3x128x128xf32, #tpu.memory_space<vmem>>, vector<1x128x128xf32>
    %47 = vector.shape_cast %46 : vector<1x128x128xf32> to vector<128x128xf32>
    %cst_53 = arith.constant dense<0.000000e+00> : vector<16x128xf32>
    %48 = tpu.matmul %45, %47, %cst_53 {dimension_numbers = #tpu.dot_dimension_numbers<[1], [0], [0], [1], [0, 0, 1, 1], [], []>} : vector<16x128xf32>, vector<128x128xf32>, vector<16x128xf32> -> vector<16x128xf32>
    %49 = arith.addf %44, %48 : vector<16x128xf32>
    %c1_54 = arith.constant 1 : index
    %c0_55 = arith.constant 0 : index
    %50 = vector.load %arg11[%c1_54, %c0_55] : memref<18x128xf32, #tpu.memory_space<vmem>>, vector<16x128xf32>
    %c1_56 = arith.constant 1 : index
    %c0_57 = arith.constant 0 : index
    %c0_58 = arith.constant 0 : index
    %51 = vector.load %arg7[%c1_56, %c0_57, %c0_58] : memref<3x128x128xf32, #tpu.memory_space<vmem>>, vector<1x128x128xf32>
    %52 = vector.shape_cast %51 : vector<1x128x128xf32> to vector<128x128xf32>
    %cst_59 = arith.constant dense<0.000000e+00> : vector<16x128xf32>
    %53 = tpu.matmul %50, %52, %cst_59 {dimension_numbers = #tpu.dot_dimension_numbers<[1], [0], [0], [1], [0, 0, 1, 1], [], []>} : vector<16x128xf32>, vector<128x128xf32>, vector<16x128xf32> -> vector<16x128xf32>
    %54 = arith.addf %49, %53 : vector<16x128xf32>
    %c2_60 = arith.constant 2 : index
    %c0_61 = arith.constant 0 : index
    %55 = vector.load %arg11[%c2_60, %c0_61] : memref<18x128xf32, #tpu.memory_space<vmem>>, vector<16x128xf32>
    %c2_62 = arith.constant 2 : index
    %c0_63 = arith.constant 0 : index
    %c0_64 = arith.constant 0 : index
    %56 = vector.load %arg7[%c2_62, %c0_63, %c0_64] : memref<3x128x128xf32, #tpu.memory_space<vmem>>, vector<1x128x128xf32>
    %57 = vector.shape_cast %56 : vector<1x128x128xf32> to vector<128x128xf32>
    %cst_65 = arith.constant dense<0.000000e+00> : vector<16x128xf32>
    %58 = tpu.matmul %55, %57, %cst_65 {dimension_numbers = #tpu.dot_dimension_numbers<[1], [0], [0], [1], [0, 0, 1, 1], [], []>} : vector<16x128xf32>, vector<128x128xf32>, vector<16x128xf32> -> vector<16x128xf32>
    %59 = arith.addf %54, %58 : vector<16x128xf32>
    %c0_66 = arith.constant 0 : index
    %c0_67 = arith.constant 0 : index
    %60 = vector.load %arg8[%c0_66, %c0_67] : memref<2x128xf32, #tpu.memory_space<vmem>>, vector<1x128xf32>
    %61 = vector.broadcast %60 : vector<1x128xf32> to vector<16x128xf32>
    %62 = arith.mulf %59, %61 : vector<16x128xf32>
    %c1_68 = arith.constant 1 : index
    %c0_69 = arith.constant 0 : index
    %63 = vector.load %arg8[%c1_68, %c0_69] : memref<2x128xf32, #tpu.memory_space<vmem>>, vector<1x128xf32>
    %64 = vector.broadcast %63 : vector<1x128xf32> to vector<16x128xf32>
    %65 = arith.addf %62, %64 : vector<16x128xf32>
    %cst_70 = arith.constant 0.000000e+00 : f32
    %66 = vector.broadcast %cst_70 : f32 to vector<16x128xf32>
    %67 = arith.maximumf %65, %66 : vector<16x128xf32>
    %68 = vector.shape_cast %67 : vector<16x128xf32> to vector<1x16x128xf32>
    %c0_71 = arith.constant 0 : index
    %c0_72 = arith.constant 0 : index
    %c0_73 = arith.constant 0 : index
    %69 = vector.load %arg9[%c0_71, %c0_72, %c0_73] : memref<1x16x128xf32, #tpu.memory_space<vmem>>, vector<1x16x128xf32>
    tpu.vector_store %arg9[%c0_71, %c0_72, %c0_73], %68 {strides = array<i32>} : memref<1x16x128xf32, #tpu.memory_space<vmem>>, vector<1x16x128xf32>,
    return
  }
  func.func @transform_0(%arg0: i32) -> (i32, i32, i32) {
    %c0_i32 = arith.constant 0 : i32
    %c0_i32_0 = arith.constant 0 : i32
    %c0_i32_1 = arith.constant 0 : i32
    return %arg0, %c0_i32, %c0_i32_0 : i32, i32, i32
  }
  func.func @transform_1(%arg0: i32) -> (i32, i32, i32) {
    %c0_i32 = arith.constant 0 : i32
    %c0_i32_0 = arith.constant 0 : i32
    %c0_i32_1 = arith.constant 0 : i32
    return %arg0, %c0_i32, %c0_i32_0 : i32, i32, i32
  }
  func.func @transform_2(%arg0: i32) -> (i32, i32) {
    %c0_i32 = arith.constant 0 : i32
    %c0_i32_0 = arith.constant 0 : i32
    %c0_i32_1 = arith.constant 0 : i32
    return %c0_i32, %c0_i32_0 : i32, i32
  }
  func.func @transform_3(%arg0: i32) -> (i32, i32) {
    %c0_i32 = arith.constant 0 : i32
    %c0_i32_0 = arith.constant 0 : i32
    %c0_i32_1 = arith.constant 0 : i32
    return %c0_i32, %c0_i32_0 : i32, i32
  }
  func.func @transform_4(%arg0: i32) -> (i32, i32, i32) {
    %c0_i32 = arith.constant 0 : i32
    %c0_i32_0 = arith.constant 0 : i32
    %c0_i32_1 = arith.constant 0 : i32
    %c0_i32_2 = arith.constant 0 : i32
    return %c0_i32, %c0_i32_0, %c0_i32_1 : i32, i32, i32
  }
  func.func @transform_5(%arg0: i32) -> (i32, i32) {
    %c0_i32 = arith.constant 0 : i32
    %c0_i32_0 = arith.constant 0 : i32
    %c0_i32_1 = arith.constant 0 : i32
    return %c0_i32, %c0_i32_0 : i32, i32
  }
  func.func @transform_6(%arg0: i32) -> (i32, i32, i32) {
    %c0_i32 = arith.constant 0 : i32
    %c0_i32_0 = arith.constant 0 : i32
    %c0_i32_1 = arith.constant 0 : i32
    %c0_i32_2 = arith.constant 0 : i32
    return %c0_i32, %c0_i32_0, %c0_i32_1 : i32, i32, i32
  }
  func.func @transform_7(%arg0: i32) -> (i32, i32) {
    %c0_i32 = arith.constant 0 : i32
    %c0_i32_0 = arith.constant 0 : i32
    %c0_i32_1 = arith.constant 0 : i32
    return %c0_i32, %c0_i32_0 : i32, i32
  }
  func.func @transform_8(%arg0: i32) -> (i32, i32, i32) {
    %c0_i32 = arith.constant 0 : i32
    %c0_i32_0 = arith.constant 0 : i32
    %c0_i32_1 = arith.constant 0 : i32
    return %arg0, %c0_i32, %c0_i32_0 : i32, i32, i32
  }
}

</mosaic_0001>

<bundles_post_ra>
// kernel: tile.23
= control target key start
LH: loop header
LB: loop body
LE: loop exit
PB: predicated region body
PF: predicated region fallthrough
CT: control target
= control target key end

     0   :  { %s28_s0 = inlined_call_operand.vmem [shape: f32[8], index: 0, kind: input, shape index: {}]   ;;  %s29_s1 = inlined_call_operand.vmem [shape: f32[16,8], index: 1, kind: output, shape index: {}]  }
   0x1   :  { %v4_v0 = vld [vmem:[%s28_s0] ss:$0 sm:$0xff] }
   0x2   :  { %5 = vst [vmem:[%s29_s1] sm:$0xff] %v4_v0  ;;  %8 = vst [vmem:[%s29_s1 + $0x8] sm:$0xff] %v4_v0 }

// kernel: tile.28
= control target key start
LH: loop header
LB: loop body
LE: loop exit
PB: predicated region body
PF: predicated region fallthrough
CT: control target
= control target key end

     0   :  { %s133_s10 = smov 120   ;;  %s134_s11 = smov 104   ;;  %vm3_vm0 = vcmask 64512   ;;  %vm9_vm1 = vcmask 1048512   ;;  %vm15_vm2 = vcmask 982912   ;;  %vm21_vm3 = vcmask 917312   ;;  %s209_s0 = inlined_call_operand.vmem [shape: f32[16,8], index: 0, kind: input, shape index: {}]   ;;  %s210_s1 = inlined_call_operand.vmem [shape: f32[1,128], index: 1, kind: output, shape index: {}]  }
   0x1   :  { %v103_v0 = vld [vmem:[%s209_s0 + $0xf] sm:$0x1]   ;;  %v105_v1 = vld [vmem:[%s209_s0 + $0xd] sm:$0x1]   ;;  %v104_v2 = vld [vmem:[%s209_s0 + $0xe] sm:$0x1]  }
   0x2   :  { %7 = vrot.lane.b32.xlu0 %v103_v0, %s133_s10  ;;  %19 = vrot.lane.b32.xlu1 %v105_v1, %s134_s11  ;;  %v106_v3 = vld [vmem:[%s209_s0 + $0xc] sm:$0x1]   ;;  %s135_s16 = smov 112   ;;  %s136_s17 = smov 96   ;;  %v107_v4 = vld [vmem:[%s209_s0 + $0xb] sm:$0x1]  }
   0x3   :  { %v108_v5 = vld [vmem:[%s209_s0 + $0xa] sm:$0x1]   ;;  %v2_v6 = vld [vmem:[%s209_s0] sm:$0x1]   ;;  %s137_s24 = smov 88   ;;  %s138_s25 = smov 80  }
   0x4   :  { %4 = vst.msk [vmem:[#allocation0] sm:$0x1] %vm3_vm0, %v2_v6   ;;  %v109_v7 = vld [vmem:[%s209_s0 + $0x9] sm:$0x1]   ;;  %v110_v8 = vld [vmem:[%s209_s0 + $0x8] sm:$0x1]  }
   0x5   :  { %s139_s30 = smov 72   ;;  %s140_s2 = smov 64   ;;  %v111_v9 = vld [vmem:[%s209_s0 + $0x7] sm:$0x1]   ;;  %v112_v10 = vld [vmem:[%s209_s0 + $0x6] sm:$0x1]  }
   0x6   :  { %13 = vrot.lane.b32.xlu0 %v104_v2, %s135_s16  ;;  %25 = vrot.lane.b32.xlu1 %v106_v3, %s136_s17  ;;  %s141_s7 = smov 56   ;;  %s142_s8 = smov 48   ;;  %v113_v11 = vld [vmem:[%s209_s0 + $0x5] sm:$0x1]   ;;  %v114_v12 = vld [vmem:[%s209_s0 + $0x4] sm:$0x1]  }
   0x7   :  { %s143_s13 = smov 40   ;;  %s144_s14 = smov 32   ;;  %v115_v13 = vld [vmem:[%s209_s0 + $0x3] sm:$0x1]   ;;  %v116_v14 = vld [vmem:[%s209_s0 + $0x2] sm:$0x1]  }
   0x8   :  { %s145_s19 = smov 24   ;;  %s146_s20 = smov 16   ;;  %v117_v15 = vld [vmem:[%s209_s0 + $0x1] sm:$0x1]   ;;  %vm27_vm4 = vcmask 851712   ;;  %vm33_vm5 = vcmask 786112  }
   0x9   :  { %s147_s0 = smov 8   ;;  %vm39_vm6 = vcmask 720512   ;;  %vm45_vm7 = vcmask 654912   ;;  %vm51_vm8 = vcmask 589312   ;;  %vm57_vm9 = vcmask 523712  }
   0xa   :  { %31 = vrot.lane.b32.xlu0 %v107_v4, %s137_s24  ;;  %37 = vrot.lane.b32.xlu1 %v108_v5, %s138_s25  ;;  %vm63_vm10 = vcmask 458112   ;;  %vm69_vm11 = vcmask 392512   ;;  %vm75_vm12 = vcmask 326912   ;;  %vm81_vm13 = vcmask 261312  }
   0xb   :  { %vm87_vm14 = vcmask 195712   ;;  %vm93_vm15 = vcmask 130112  }
   0xe   :  { %43 = vrot.lane.b32.xlu0 %v109_v7, %s139_s30  ;;  %49 = vrot.lane.b32.xlu1 %v110_v8, %s140_s2 }
  0x12   :  { %55 = vrot.lane.b32.xlu0 %v111_v9, %s141_s7  ;;  %61 = vrot.lane.b32.xlu1 %v112_v10, %s142_s8 }
  0x16   :  { %67 = vrot.lane.b32.xlu0 %v113_v11, %s143_s13  ;;  %73 = vrot.lane.b32.xlu1 %v114_v12, %s144_s14 }
  0x1a   :  { %79 = vrot.lane.b32.xlu0 %v115_v13, %s145_s19  ;;  %85 = vrot.lane.b32.xlu1 %v116_v14, %s146_s20 }
  0x1e   :  { %91 = vrot.lane.b32.xlu0 %v117_v15, %s147_s0 }
  0x74   :  { %v8_v16 = vpop.permute.xlu0 %7   ;;  %v20_v17 = vpop.permute.xlu1 %19  }
  0x75   :  { %10 = vst.msk [vmem:[#allocation0] sm:$0x1] %vm9_vm1, %v8_v16  }
  0x78   :  { %v14_v18 = vpop.permute.xlu0 %13   ;;  %v26_v19 = vpop.permute.xlu1 %25  }
  0x79   :  { %16 = vst.msk [vmem:[#allocation0] sm:$0x1] %vm15_vm2, %v14_v18  }
  0x7a   :  { %22 = vst.msk [vmem:[#allocation0] sm:$0x1] %vm21_vm3, %v20_v17  }
  0x7b   :  { %28 = vst.msk [vmem:[#allocation0] sm:$0x1] %vm27_vm4, %v26_v19  }
  0x7c   :  { %v32_v20 = vpop.permute.xlu0 %31   ;;  %v38_v21 = vpop.permute.xlu1 %37  }
  0x7d   :  { %34 = vst.msk [vmem:[#allocation0] sm:$0x1] %vm33_vm5, %v32_v20  }
  0x7e   :  { %40 = vst.msk [vmem:[#allocation0] sm:$0x1] %vm39_vm6, %v38_v21  }
  0x80   :  { %v44_v22 = vpop.permute.xlu0 %43   ;;  %v50_v23 = vpop.permute.xlu1 %49  }
  0x81   :  { %46 = vst.msk [vmem:[#allocation0] sm:$0x1] %vm45_vm7, %v44_v22  }
  0x82   :  { %52 = vst.msk [vmem:[#allocation0] sm:$0x1] %vm51_vm8, %v50_v23  }
  0x84   :  { %v56_v24 = vpop.permute.xlu0 %55   ;;  %v62_v25 = vpop.permute.xlu1 %61  }
  0x85   :  { %58 = vst.msk [vmem:[#allocation0] sm:$0x1] %vm57_vm9, %v56_v24  }
  0x86   :  { %64 = vst.msk [vmem:[#allocation0] sm:$0x1] %vm63_vm10, %v62_v25  }
  0x88   :  { %v68_v26 = vpop.permute.xlu0 %67   ;;  %v74_v27 = vpop.permute.xlu1 %73  }
  0x89   :  { %70 = vst.msk [vmem:[#allocation0] sm:$0x1] %vm69_vm11, %v68_v26  }
  0x8a   :  { %76 = vst.msk [vmem:[#allocation0] sm:$0x1] %vm75_vm12, %v74_v27  }
  0x8c   :  { %v80_v28 = vpop.permute.xlu0 %79   ;;  %v86_v29 = vpop.permute.xlu1 %85  }
  0x8d   :  { %82 = vst.msk [vmem:[#allocation0] sm:$0x1] %vm81_vm13, %v80_v28  }
  0x8e   :  { %88 = vst.msk [vmem:[#allocation0] sm:$0x1] %vm87_vm14, %v86_v29  }
  0x90   :  { %v92_v30 = vpop.permute.xlu0 %91  }
  0x91   :  { %94 = vst.msk [vmem:[#allocation0] sm:$0x1] %vm93_vm15, %v92_v30  }
  0x98   :  { %v99_v31 = vld [vmem:[#allocation0] sm:$0x1] }
  0x99   :  { %102 = vst [vmem:[%s210_s1] sm:$0x1] %v99_v31 }

// kernel: upsampled_part_forward.1
= control target key start
LH: loop header
LB: loop body
LE: loop exit
PB: predicated region body
PF: predicated region fallthrough
CT: control target
= control target key end

     0   :  { %s1731_s27 = smov 0   ;;  %s2293_s0 = inlined_call_operand.vmem [shape: f32[2,16,128], index: 0, kind: input, shape index: {}]   ;;  %s2294_s1 = inlined_call_operand.vmem [shape: f32[2,16,128], index: 1, kind: input, shape index: {}]   ;;  %s2295_s2 = inlined_call_operand.vmem [shape: f32[128,128], index: 2, kind: input, shape index: {}]   ;;  %s2296_s3 = inlined_call_operand.vmem [shape: f32[1,128], index: 3, kind: input, shape index: {}]   ;;  %s2297_s4 = inlined_call_operand.vmem [shape: f32[3,256,128], index: 4, kind: input, shape index: {}]   ;;  %s2298_s5 = inlined_call_operand.vmem [shape: f32[2,128], index: 5, kind: input, shape index: {}]   ;;  %s2299_s6 = inlined_call_operand.vmem [shape: f32[3,128,128], index: 6, kind: input, shape index: {}]   ;;  %s2300_s7 = inlined_call_operand.vmem [shape: f32[2,128], index: 7, kind: input, shape index: {}]   ;;  %s2301_s8 = inlined_call_operand.vmem [shape: f32[2,16,128], index: 8, kind: output, shape index: {}]  }
   0x1 LB: > { %s1225_s28 = sadd.s32 4294967295, %s1683_s27   ;;  %p1229_p0 = scmp.ge.s32.totalorder %s1683_s27, 1  ;;  %s1683_s27 = sphi %s1731_s27, %s18_s27  }
   0x2   : > { %p272_p1 = scmp.lt.s32.totalorder %s1683_s27, 3 }
   0x4   : > { %p273_p2 = pnand %p1229_p0, %p272_p1 }
   0x5   : > { %p311_p3 = scmp.lt.s32.totalorder (!%p273_p2), %s1225_s28, 1 }
   0x6   : > { %276 = sbr.rel (%p273_p2) target bundleno = 733 (0x2dd), region = 52 }
   0xb   : > { %v368_v0 = vld [vmem:[%s2295_s2 + $0x78] sm:$0xff]  ;;  %v367_v1 = vld [vmem:[%s2295_s2 + $0x70] sm:$0xff]  ;;  %v366_v2 = vld [vmem:[%s2295_s2 + $0x68] sm:$0xff]  ;;  %s2303_s28 = smov (!%p311_p3, %s1225_s28), 1  ;;  %v326_v60 = vlaneseq  ;;  %vm341_vm1 = vcmask 1040384   ;;  %vm541_vm2 = vcmask 1046528  }
   0xc   : > { %1528 = vmatprep.subr.mxu0 %v368_v0  ;;  %v365_v3 = vld [vmem:[%s2295_s2 + $0x60] sm:$0xff]  ;;  %s1751_s15 = sshll.u32 %s2303_s28, 4  ;;  %v364_v4 = vld [vmem:[%s2295_s2 + $0x58] sm:$0xff]  ;;  %v363_v11 = vld [vmem:[%s2295_s2 + $0x50] sm:$0xff]  ;;  %vm747_vm3 = vcmask 1045504  }
   0xd   : > { %1529 = vmatpush3.msra.mxu0 %v368_v0  ;;  %s1760_s20 = scalar_lea.vmem %s2293_s0, %s1751_s15  ;;  %s320_s23 = scalar_lea.vmem %s2294_s1, %s1751_s15  ;;  %v1268_v10 = vld [vmem:[%s2297_s4 + $0x1f8] sm:$0xff]  ;;  %v1267_v13 = vld [vmem:[%s2297_s4 + $0x1f0] sm:$0xff]  ;;  %v362_v15 = vld [vmem:[%s2295_s2 + $0x48] sm:$0xff]  ;;  %vm328_vm0 = vcmp.lt.s32.totalorder %v326_v60, 256 }
   0xe   : > { %1530 = vmatprep.subr.mxu0 %v367_v1  ;;  %v1766_v5 = vld [vmem:[%s320_s23] sm:$0xff]  ;;  %v1768_v6 = vld [vmem:[%s320_s23 + $0x8] sm:$0xff]  ;;  %1360 = vmatprep.subr.mxu1 %v1268_v10  ;;  %v1252_v12 = vld [vmem:[%s2297_s4 + $0x178] sm:$0xff]  ;;  %s325_s29 = scalar_lea.vmem %s2301_s8, %s1751_s15 }
   0xf   : > { %1531 = vmatpush3.msra.mxu0 %v367_v1  ;;  %v351_v7 = vld [vmem:[%s1760_s20] sm:$0xff]  ;;  %v342_v8 = vrot.slane %v1766_v5, 7  ;;  %v343_v9 = vrot.slane %v1768_v6, 7  ;;  %1361 = vmatpush3.msra.mxu1 %v1252_v12  ;;  %v1251_v14 = vld [vmem:[%s2297_s4 + $0x170] sm:$0xff]  ;;  %v1266_v16 = vld [vmem:[%s2297_s4 + $0x1e8] sm:$0xff] }
  0x10   : > { %1532 = vmatprep.subr.mxu0 %v366_v2  ;;  %1560 = vmatprep.mubr.f32.mxu0 %v351_v7  ;;  %v1250_v17 = vld [vmem:[%s2297_s4 + $0x168] sm:$0xff]  ;;  %v1265_v18 = vld [vmem:[%s2297_s4 + $0x1e0] sm:$0xff]  ;;  %v1264_v21 = vld [vmem:[%s2297_s4 + $0x1d8] sm:$0xff] }
  0x11   : > { %1533 = vmatpush3.msra.mxu0 %v366_v2  ;;  %348 = vst [vmem:[#allocation2] sm:$0xfe] %v342_v8  ;;  %350 = vst [vmem:[#allocation2 + $0x20] sm:$0x1] %v343_v9  ;;  %1362 = vmatprep.subr.mxu1 %v1267_v13  ;;  %v361_v19 = vld [vmem:[%s2295_s2 + $0x40] sm:$0xff]  ;;  %v360_v22 = vld [vmem:[%s2295_s2 + $0x38] sm:$0xff] }
  0x12   : > { %1534 = vmatprep.subr.mxu0 %v365_v3  ;;  %1363 = vmatpush3.msra.mxu1 %v1251_v14  ;;  %v1249_v20 = vld [vmem:[%s2297_s4 + $0x160] sm:$0xff]  ;;  %v1248_v23 = vld [vmem:[%s2297_s4 + $0x158] sm:$0xff]  ;;  %v1263_v24 = vld [vmem:[%s2297_s4 + $0x1d0] sm:$0xff] }
  0x13   : > { %1535 = vmatpush3.msra.mxu0 %v365_v3  ;;  %1364 = vmatprep.subr.mxu1 %v1266_v16  ;;  %v359_v25 = vld [vmem:[%s2295_s2 + $0x30] sm:$0xff]  ;;  %v1262_v27 = vld [vmem:[%s2297_s4 + $0x1c8] sm:$0xff]  ;;  %v357_v29 = vld [vmem:[%s2295_s2 + $0x20] sm:$0xff]  ;;  %v1685_v3 = vmov 0.0  }
  0x14   : > { %1536 = vmatprep.subr.mxu0 %v364_v4  ;;  %1365 = vmatpush3.msra.mxu1 %v1250_v17  ;;  %v1247_v26 = vld [vmem:[%s2297_s4 + $0x150] sm:$0xff]  ;;  %v358_v28 = vld [vmem:[%s2295_s2 + $0x28] sm:$0xff]  ;;  %v356_v30 = vld [vmem:[%s2295_s2 + $0x18] sm:$0xff]  ;;  %330 = vst.msk [vmem:[#allocation2] ss:$8 sm:$0x3] %vm328_vm0, %v1685_v3 }
  0x15   : > { %1537 = vmatpush3.msra.mxu0 %v364_v4  ;;  %1366 = vmatprep.subr.mxu1 %v1265_v18  ;;  %v355_v31 = vld [vmem:[%s2295_s2 + $0x10] sm:$0xff]  ;;  %v354_v32 = vld [vmem:[%s2295_s2 + $0x8] sm:$0xff]  ;;  %v353_v33 = vld [vmem:[%s2295_s2] sm:$0xff]  ;;  %333 = vst.msk [vmem:[#allocation2 + $0x21] ss:$8 sm:$0x3] %vm328_vm0, %v1685_v3  ;;  %v1948_v4 = vsel %vm341_vm1, %v342_v8, %v343_v9 }
  0x16   : > { %1538 = vmatprep.subr.mxu0 %v363_v11  ;;  %1367 = vmatpush3.msra.mxu1 %v1249_v20  ;;  %v352_v34 = vld [vmem:[%s1760_s20 + $0x8] sm:$0xff]  ;;  %v497_v35 = vld [vmem:[%s2297_s4 + $0xf8] sm:$0xff]  ;;  %v496_v37 = vld [vmem:[%s2297_s4 + $0xf0] sm:$0xff]  ;;  %335 = vst [vmem:[#allocation3] sm:$0x1] %v1685_v3 }
  0x17   : > { %1539 = vmatpush3.msra.mxu0 %v363_v11  ;;  %1368 = vmatprep.subr.mxu1 %v1264_v21  ;;  %v481_v36 = vld [vmem:[%s2297_s4 + $0x78] sm:$0xff]  ;;  %v480_v38 = vld [vmem:[%s2297_s4 + $0x70] sm:$0xff]  ;;  %v495_v39 = vld [vmem:[%s2297_s4 + $0xe8] sm:$0xff]  ;;  %336 = vst [vmem:[#allocation3 + $0x11] sm:$0x1] %v1685_v3 }
  0x18   : > { %1540 = vmatprep.subr.mxu0 %v362_v15  ;;  %1369 = vmatpush3.msra.mxu1 %v1248_v23  ;;  %v479_v40 = vld [vmem:[%s2297_s4 + $0x68] sm:$0xff]  ;;  %v494_v41 = vld [vmem:[%s2297_s4 + $0xe0] sm:$0xff]  ;;  %v493_v43 = vld [vmem:[%s2297_s4 + $0xd8] sm:$0xff] }
  0x19   : > { %1541 = vmatpush3.msra.mxu0 %v362_v15  ;;  %1370 = vmatprep.subr.mxu1 %v1263_v24  ;;  %v478_v42 = vld [vmem:[%s2297_s4 + $0x60] sm:$0xff]  ;;  %v477_v44 = vld [vmem:[%s2297_s4 + $0x58] sm:$0xff]  ;;  %v492_v45 = vld [vmem:[%s2297_s4 + $0xd0] sm:$0xff] }
  0x1a   : > { %1542 = vmatprep.subr.mxu0 %v361_v19  ;;  %1371 = vmatpush3.msra.mxu1 %v1247_v26  ;;  %v476_v46 = vld [vmem:[%s2297_s4 + $0x50] sm:$0xff]  ;;  %v491_v47 = vld [vmem:[%s2297_s4 + $0xc8] sm:$0xff]  ;;  %v490_v49 = vld [vmem:[%s2297_s4 + $0xc0] sm:$0xff] }
  0x1b   : > { %1543 = vmatpush3.msra.mxu0 %v361_v19  ;;  %1372 = vmatprep.subr.mxu1 %v1262_v27  ;;  %v475_v48 = vld [vmem:[%s2297_s4 + $0x48] sm:$0xff]  ;;  %v474_v50 = vld [vmem:[%s2297_s4 + $0x40] sm:$0xff]  ;;  %v489_v52 = vld [vmem:[%s2297_s4 + $0xb8] sm:$0xff] }
  0x1c   : > { %1544 = vmatprep.subr.mxu0 %v360_v22  ;;  %v1246_v51 = vld [vmem:[%s2297_s4 + $0x148] sm:$0xff]  ;;  %v1261_v53 = vld [vmem:[%s2297_s4 + $0x1c0] sm:$0xff]  ;;  %v473_v54 = vld [vmem:[%s2297_s4 + $0x38] sm:$0xff] }
  0x1d   : > { %1545 = vmatpush3.msra.mxu0 %v360_v22  ;;  %1373 = vmatpush3.msra.mxu1 %v1246_v51  ;;  %v1245_v55 = vld [vmem:[%s2297_s4 + $0x140] sm:$0xff]  ;;  %v488_v56 = vld [vmem:[%s2297_s4 + $0xb0] sm:$0xff]  ;;  %v1260_v57 = vld [vmem:[%s2297_s4 + $0x1b8] sm:$0xff] }
  0x1e   : > { %1546 = vmatprep.subr.mxu0 %v359_v25  ;;  %1374 = vmatprep.subr.mxu1 %v1261_v53  ;;  %v472_v58 = vld [vmem:[%s2297_s4 + $0x30] sm:$0xff]  ;;  %v1244_v59 = vld [vmem:[%s2297_s4 + $0x138] sm:$0xff]  ;;  %v487_v61 = vld [vmem:[%s2297_s4 + $0xa8] sm:$0xff] }
  0x1f   : > { %1547 = vmatpush3.msra.mxu0 %v359_v25  ;;  %1375 = vmatpush3.msra.mxu1 %v1245_v55  ;;  %v1259_v62 = vld [vmem:[%s2297_s4 + $0x1b0] sm:$0xff]  ;;  %v471_v63 = vld [vmem:[%s2297_s4 + $0x28] sm:$0xff]  ;;  %v486_v1 = vld [vmem:[%s2297_s4 + $0xa0] sm:$0xff] }
  0x20   : > { %1548 = vmatprep.subr.mxu0 %v358_v28  ;;  %1376 = vmatprep.subr.mxu1 %v1260_v57  ;;  %v1243_v0 = vld [vmem:[%s2297_s4 + $0x130] sm:$0xff]  ;;  %v1258_v2 = vld [vmem:[%s2297_s4 + $0x1a8] sm:$0xff]  ;;  %v470_v7 = vld [vmem:[%s2297_s4 + $0x20] sm:$0xff] }
  0x21   : > { %1549 = vmatpush3.msra.mxu0 %v358_v28  ;;  %1377 = vmatpush3.msra.mxu1 %v1244_v59  ;;  %v1242_v10 = vld [vmem:[%s2297_s4 + $0x128] sm:$0xff]  ;;  %v485_v6 = vld [vmem:[%s2297_s4 + $0x98] sm:$0xff]  ;;  %v1257_v5 = vld [vmem:[%s2297_s4 + $0x1a0] sm:$0xff] }
  0x22   : > { %1550 = vmatprep.subr.mxu0 %v357_v29  ;;  %1378 = vmatprep.subr.mxu1 %v1259_v62  ;;  %v469_v8 = vld [vmem:[%s2297_s4 + $0x18] sm:$0xff]  ;;  %v1241_v9 = vld [vmem:[%s2297_s4 + $0x120] sm:$0xff]  ;;  %v484_v11 = vld [vmem:[%s2297_s4 + $0x90] sm:$0xff] }
  0x23   : > { %1551 = vmatpush3.msra.mxu0 %v357_v29  ;;  %1379 = vmatpush3.msra.mxu1 %v1243_v0  ;;  %v1256_v12 = vld [vmem:[%s2297_s4 + $0x198] sm:$0xff]  ;;  %v468_v13 = vld [vmem:[%s2297_s4 + $0x10] sm:$0xff]  ;;  %v483_v15 = vld [vmem:[%s2297_s4 + $0x88] sm:$0xff] }
  0x24   : > { %1552 = vmatprep.subr.mxu0 %v356_v30  ;;  %1380 = vmatprep.subr.mxu1 %v1258_v2  ;;  %v1240_v14 = vld [vmem:[%s2297_s4 + $0x118] sm:$0xff]  ;;  %v1255_v16 = vld [vmem:[%s2297_s4 + $0x190] sm:$0xff]  ;;  %v467_v17 = vld [vmem:[%s2297_s4 + $0x8] sm:$0xff] }
  0x25   : > { %1553 = vmatpush3.msra.mxu0 %v356_v30  ;;  %1381 = vmatpush3.msra.mxu1 %v1242_v10  ;;  %v1239_v18 = vld [vmem:[%s2297_s4 + $0x110] sm:$0xff]  ;;  %v482_v19 = vld [vmem:[%s2297_s4 + $0x80] sm:$0xff]  ;;  %v1254_v20 = vld [vmem:[%s2297_s4 + $0x188] sm:$0xff] }
  0x26   : > { %1554 = vmatprep.subr.mxu0 %v355_v31  ;;  %1382 = vmatprep.subr.mxu1 %v1257_v5  ;;  %v466_v21 = vld [vmem:[%s2297_s4] sm:$0xff]  ;;  %v1238_v22 = vld [vmem:[%s2297_s4 + $0x108] sm:$0xff]  ;;  %v1300_v25 = vld [vmem:[%s2297_s4 + $0x2f8] sm:$0xff] }
  0x27   : > { %1555 = vmatpush3.msra.mxu0 %v355_v31  ;;  %1383 = vmatpush3.msra.mxu1 %v1241_v9  ;;  %v1253_v23 = vld [vmem:[%s2297_s4 + $0x180] sm:$0xff]  ;;  %v1282_v57 = vld [vmem:[%s2297_s4 + $0x268] sm:$0xff]  ;;  %v1280_v62 = vld [vmem:[%s2297_s4 + $0x258] sm:$0xff] }
  0x28   : > { %1556 = vmatprep.subr.mxu0 %v354_v32  ;;  %1384 = vmatprep.subr.mxu1 %v1256_v12  ;;  %v1237_v24 = vld [vmem:[%s2297_s4 + $0x100] sm:$0xff]  ;;  %v1279_v0 = vld [vmem:[%s2297_s4 + $0x250] sm:$0xff]  ;;  %v1278_v2 = vld [vmem:[%s2297_s4 + $0x248] sm:$0xff] }
  0x29   : > { %1557 = vmatpush3.msra.mxu0 %v354_v32  ;;  %1385 = vmatpush3.msra.mxu1 %v1240_v14  ;;  %v1236_v26 = vld [vmem:[%s2296_s3] ss:$0 sm:$0xff]  ;;  %v1292_v10 = vld [vmem:[%s2297_s4 + $0x2b8] sm:$0xff]  ;;  %v1291_v5 = vld [vmem:[%s2297_s4 + $0x2b0] sm:$0xff] }
  0x2a   : > { %1558 = vmatprep.subr.mxu0 %v353_v33  ;;  %1386 = vmatprep.subr.mxu1 %v1255_v16  ;;  %v1281_v60 = vld [vmem:[%s2297_s4 + $0x260] sm:$0xff]  ;;  %v1290_v9 = vld [vmem:[%s2297_s4 + $0x2a8] sm:$0xff]  ;;  %v1288_v14 = vld [vmem:[%s2297_s4 + $0x298] sm:$0xff] }
  0x2b   : > { %1559 = vmatpush3.msra.mxu0 %v353_v33  ;;  %1387 = vmatpush3.msra.mxu1 %v1239_v18  ;;  %v1293_v3 = vld [vmem:[%s2297_s4 + $0x2c0] sm:$0xff]  ;;  %v1271_v18 = vld [vmem:[%s2297_s4 + $0x210] sm:$0xff] }
  0x2c   : > { %1561 = vmatmul.mubr.f32.vlgmr.msra.gmra.mxu0 %v352_v34  ;;  %1398 = vmatprep.subr.mxu0 %v497_v35  ;;  %v498_v34 = vld [vmem:[#allocation2] sm:$0xfe] }
  0x2d   : > { %1399 = vmatpush3.msra.mxu0 %v481_v36  ;;  %1388 = vmatprep.subr.mxu1 %v1254_v20  ;;  %v542_v35 = vrot.slane %v498_v34, 1  ;;  %v543_v36 = vrot.slane %v1948_v4, 1  ;;  %v1289_v12 = vld [vmem:[%s2297_s4 + $0x2a0] sm:$0xff]  ;;  %v1317_v34 = vld [vmem:[%s2299_s6 + $0xf0] sm:$0xff] }
  0x2e   : > { %1400 = vmatprep.subr.mxu0 %v496_v37  ;;  %1389 = vmatpush3.msra.mxu1 %v1238_v22  ;;  %v706_v16 = vld [vmem:[#allocation2] sm:$0xfc] }
  0x2f   : > { %1401 = vmatpush3.msra.mxu0 %v480_v38  ;;  %1390 = vmatprep.subr.mxu1 %v1253_v23  ;;  %v462_v38 = vld [vmem:[#allocation2] sm:$0xff]  ;;  %v748_v20 = vrot.slane %v706_v16, 2  ;;  %v1270_v23 = vld [vmem:[%s2297_s4 + $0x208] sm:$0xff] }
  0x30   : > { %1402 = vmatprep.subr.mxu0 %v495_v39  ;;  %1391 = vmatpush3.msra.mxu1 %v1237_v24  ;;  %v500_v39 = vld [vmem:[#allocation2 + $0x20] sm:$0x1] }
  0x31   : > { %1403 = vmatpush3.msra.mxu0 %v479_v40  ;;  %1436 = vmatprep.subr.mxu1 %v1300_v25  ;;  %v708_v24 = vld [vmem:[#allocation2 + $0x20] sm:$0x3] }
  0x32   : > { %1404 = vmatprep.subr.mxu0 %v494_v41  ;;  %v1285_v25 = vld [vmem:[%s2297_s4 + $0x280] sm:$0xff] }
  0x33   : > { %1405 = vmatpush3.msra.mxu0 %v478_v42 }
  0x34   : > { %1406 = vmatprep.subr.mxu0 %v493_v43 }
  0x35   : > { %1407 = vmatpush3.msra.mxu0 %v477_v44 }
  0x36   : > { %1408 = vmatprep.subr.mxu0 %v492_v45  ;;  %v544_v45 = vsel %vm541_vm2, %v542_v35, %v543_v36  ;;  %v1316_v35 = vld [vmem:[%s2299_s6 + $0xe8] sm:$0xff] }
  0x37   : > { %1409 = vmatpush3.msra.mxu0 %v476_v46  ;;  %v548_v46 = vrot.slane %v500_v39, 1  ;;  %v1314_v39 = vld [vmem:[%s2299_s6 + $0xd8] sm:$0xff] }
  0x38   : > { %1410 = vmatprep.subr.mxu0 %v491_v47 }
  0x39   : > { %1411 = vmatpush3.msra.mxu0 %v475_v48  ;;  %v549_v55 = vsel %vm541_vm2, %v543_v36, %v548_v46  ;;  %v872_v36 = vld [vmem:[%s2299_s6 + $0x68] sm:$0xff]  ;;  %v869_v46 = vld [vmem:[%s2299_s6 + $0x50] sm:$0xff] }
  0x3a   : > { %1412 = vmatprep.subr.mxu0 %v490_v49  ;;  %v1284_v49 = vld [vmem:[%s2297_s4 + $0x278] sm:$0xff] }
  0x3b   : > { %1413 = vmatpush3.msra.mxu0 %v474_v50  ;;  %v1299_v50 = vld [vmem:[%s2297_s4 + $0x2f0] sm:$0xff] }
  0x3c   : > { %1414 = vmatprep.subr.mxu0 %v489_v52  ;;  %v1283_v52 = vld [vmem:[%s2297_s4 + $0x270] sm:$0xff] }
  0x3d   : > { %1415 = vmatpush3.msra.mxu0 %v473_v54  ;;  %v1298_v54 = vld [vmem:[%s2297_s4 + $0x2e8] sm:$0xff] }
  0x3e   : > { %1416 = vmatprep.subr.mxu0 %v488_v56 }
  0x3f   : > { %1417 = vmatpush3.msra.mxu0 %v472_v58  ;;  %v1297_v58 = vld [vmem:[%s2297_s4 + $0x2e0] sm:$0xff] }
  0x40   : > { %1418 = vmatprep.subr.mxu0 %v487_v61  ;;  %v1296_v61 = vld [vmem:[%s2297_s4 + $0x2d8] sm:$0xff] }
  0x41   : > { %1419 = vmatpush3.msra.mxu0 %v471_v63  ;;  %v1295_v63 = vld [vmem:[%s2297_s4 + $0x2d0] sm:$0xff] }
  0x42   : > { %1420 = vmatprep.subr.mxu0 %v486_v1  ;;  %v1294_v1 = vld [vmem:[%s2297_s4 + $0x2c8] sm:$0xff] }
  0x43   : > { %1421 = vmatpush3.msra.mxu0 %v470_v7  ;;  %v1277_v7 = vld [vmem:[%s2297_s4 + $0x240] sm:$0xff] }
  0x44   : > { %1422 = vmatprep.subr.mxu0 %v485_v6  ;;  %v1276_v6 = vld [vmem:[%s2297_s4 + $0x238] sm:$0xff] }
  0x45   : > { %1423 = vmatpush3.msra.mxu0 %v469_v8  ;;  %v1275_v8 = vld [vmem:[%s2297_s4 + $0x230] sm:$0xff] }
  0x46   : > { %1424 = vmatprep.subr.mxu0 %v484_v11  ;;  %v1274_v11 = vld [vmem:[%s2297_s4 + $0x228] sm:$0xff] }
  0x47   : > { %1425 = vmatpush3.msra.mxu0 %v468_v13  ;;  %v1273_v13 = vld [vmem:[%s2297_s4 + $0x220] sm:$0xff] }
  0x48   : > { %1426 = vmatprep.subr.mxu0 %v483_v15  ;;  %v1272_v15 = vld [vmem:[%s2297_s4 + $0x218] sm:$0xff] }
  0x49   : > { %1427 = vmatpush3.msra.mxu0 %v467_v17  ;;  %v1287_v17 = vld [vmem:[%s2297_s4 + $0x290] sm:$0xff] }
  0x4a   : > { %1428 = vmatprep.subr.mxu0 %v482_v19  ;;  %v1286_v19 = vld [vmem:[%s2297_s4 + $0x288] sm:$0xff] }
  0x4b   : > { %1429 = vmatpush3.msra.mxu0 %v466_v21  ;;  %v749_v21 = vrot.slane %v1948_v4, 2 }
  0xec   : > { %v1562_v27 = vpop.f32.mrf.mxu0 }
  0xed   : > { %v448_v28 = vadd.f32 %v1562_v27, %v1236_v26 }
  0xee   : > { %v442_v29 = vpop.f32.mrf.mxu0 }
  0xef   : > { %v454_v30 = vrot.slane %v448_v28, 7  ;;  %v443_v31 = vadd.f32 %v1236_v26, %v442_v29  ;;  %v1269_v26 = vld [vmem:[%s2297_s4 + $0x200] sm:$0xff]  ;;  %v754_v28 = vrot.slane %v708_v24, 2 }
  0xf1   : > { %461 = vst [vmem:[#allocation2 + $0x28] sm:$0x1] %v454_v30  ;;  %v453_v32 = vrot.slane %v443_v31, 7  ;;  %v1318_v31 = vld [vmem:[%s2299_s6 + $0xf8] sm:$0xff] }
  0xf2   : > { %1563 = vmatprep.subr.mxu0 %v1318_v31 }
  0xf3   : > { %v2017_v33 = vsel %vm341_vm1, %v453_v32, %v454_v30  ;;  %459 = vst [vmem:[#allocation2 + $0x8] sm:$0xfe] %v453_v32  ;;  %v755_v30 = vsel %vm747_vm3, %v749_v21, %v754_v28  ;;  %v874_v32 = vld [vmem:[%s2299_s6 + $0x78] sm:$0xff] }
  0xf4   : > { %v546_v42 = vrot.slane %v2017_v33, 1  ;;  %v752_v56 = vrot.slane %v2017_v33, 2 }
  0xf8   : > { %v501_v37 = vld [vmem:[#allocation2 + $0x28] sm:$0x1] }
  0xf9   : > { %v550_v44 = vrot.slane %v501_v37, 1  ;;  %v709_v22 = vld [vmem:[#allocation2 + $0x28] sm:$0x3]  ;;  %v1315_v37 = vld [vmem:[%s2299_s6 + $0xe0] sm:$0xff] }
  0xfa   : > { %v463_v40 = vld [vmem:[#allocation2 + $0x8] sm:$0xff]  ;;  %v756_v27 = vrot.slane %v709_v22, 2 }
  0xfb   : > { %v499_v41 = vld [vmem:[#allocation2 + $0x8] sm:$0xfe]  ;;  %695 = vmatprep.mubr.f32.mxu0 %v463_v40  ;;  %v551_v51 = vsel %vm541_vm2, %v546_v42, %v550_v44  ;;  %v1313_v40 = vld [vmem:[%s2299_s6 + $0xd0] sm:$0xff]  ;;  %v870_v44 = vld [vmem:[%s2299_s6 + $0x58] sm:$0xff] }
  0xfc   : > { %v545_v43 = vrot.slane %v499_v41, 1  ;;  %696 = vmatmul.mubr.f32.vlgmr.msra.gmra.mxu0 %v462_v38  ;;  %v707_v47 = vld [vmem:[#allocation2 + $0x8] sm:$0xfc]  ;;  %v757_v29 = vsel %vm747_vm3, %v752_v56, %v756_v27  ;;  %v871_v38 = vld [vmem:[%s2299_s6 + $0x60] sm:$0xff] }
  0xfd   : > { %700 = vmatprep.mubr.f32.mxu0 %v2017_v33  ;;  %v751_v53 = vrot.slane %v707_v47, 2  ;;  %v873_v33 = vld [vmem:[%s2299_s6 + $0x70] sm:$0xff]  ;;  %1564 = vmatpush3.msra.mxu0 %v1318_v31  ;;  %v1312_v41 = vld [vmem:[%s2299_s6 + $0xc8] sm:$0xff] }
  0xfe   : > { %v547_v48 = vsel %vm541_vm2, %v545_v43, %v546_v42  ;;  %1565 = vmatprep.subr.mxu0 %v1317_v34  ;;  %v1311_v42 = vld [vmem:[%s2299_s6 + $0xc0] sm:$0xff]  ;;  %v1310_v43 = vld [vmem:[%s2299_s6 + $0xb8] sm:$0xff]  ;;  %v1308_v47 = vld [vmem:[%s2299_s6 + $0xa8] sm:$0xff] }
  0xff   : > { %620 = vmatprep.mubr.f32.mxu1 %v547_v48  ;;  %v753_v59 = vsel %vm747_vm3, %v751_v53, %v752_v56  ;;  %1566 = vmatpush3.msra.mxu0 %v1317_v34  ;;  %v868_v48 = vld [vmem:[%s2299_s6 + $0x48] sm:$0xff]  ;;  %v1305_v53 = vld [vmem:[%s2299_s6 + $0x90] sm:$0xff]  ;;  %v1331_v34 = vld [vmem:[%s2299_s6 + $0x160] sm:$0xff] }
 0x100   : > { %621 = vmatmul.mubr.f32.vlgmr.msra.gmra.mxu1 %v544_v45  ;;  %701 = vmatmul.mubr.f32.gmra.mxu0 %v1948_v4  ;;  %v750_v4 = vsel %vm747_vm3, %v748_v20, %v749_v21  ;;  %v1309_v45 = vld [vmem:[%s2299_s6 + $0xb0] sm:$0xff]  ;;  %v864_v56 = vld [vmem:[%s2299_s6 + $0x28] sm:$0xff]  ;;  %v1302_v20 = vld [vmem:[%s2298_s5 + $0x1] ss:$0 sm:$0xff] }
 0x101   : > { %1437 = vmatpush3.msra.mxu1 %v1284_v49  ;;  %625 = vmatprep.mubr.f32.mxu1 %v551_v51  ;;  %v1307_v49 = vld [vmem:[%s2299_s6 + $0xa0] sm:$0xff]  ;;  %v1306_v51 = vld [vmem:[%s2299_s6 + $0x98] sm:$0xff]  ;;  %v1332_v31 = vld [vmem:[%s2299_s6 + $0x168] sm:$0xff] }
 0x102   : > { %1438 = vmatprep.subr.mxu1 %v1299_v50  ;;  %1567 = vmatprep.subr.mxu0 %v1316_v35  ;;  %v867_v50 = vld [vmem:[%s2299_s6 + $0x40] sm:$0xff] }
 0x103   : > { %1439 = vmatpush3.msra.mxu1 %v1283_v52  ;;  %1568 = vmatpush3.msra.mxu0 %v1316_v35  ;;  %v866_v52 = vld [vmem:[%s2299_s6 + $0x38] sm:$0xff] }
 0x104   : > { %1440 = vmatprep.subr.mxu1 %v1298_v54  ;;  %626 = vmatmul.mubr.f32.gmra.mxu1 %v549_v55  ;;  %v865_v54 = vld [vmem:[%s2299_s6 + $0x30] sm:$0xff]  ;;  %v1304_v55 = vld [vmem:[%s2299_s6 + $0x88] sm:$0xff] }
 0x105   : > { %1441 = vmatpush3.msra.mxu1 %v1282_v57  ;;  %826 = vmatprep.mubr.f32.mxu1 %v753_v59  ;;  %v1303_v57 = vld [vmem:[%s2299_s6 + $0x80] sm:$0xff]  ;;  %v1334_v59 = vld [vmem:[%s2299_s6 + $0x178] sm:$0xff] }
 0x106   : > { %1442 = vmatprep.subr.mxu1 %v1297_v58  ;;  %1569 = vmatprep.subr.mxu0 %v1315_v37  ;;  %v863_v58 = vld [vmem:[%s2299_s6 + $0x20] sm:$0xff] }
 0x107   : > { %1443 = vmatpush3.msra.mxu1 %v1281_v60  ;;  %1570 = vmatpush3.msra.mxu0 %v1315_v37  ;;  %v862_v60 = vld [vmem:[%s2299_s6 + $0x18] sm:$0xff]  ;;  %v1329_v37 = vld [vmem:[%s2299_s6 + $0x150] sm:$0xff] }
 0x108   : > { %1444 = vmatprep.subr.mxu1 %v1296_v61  ;;  %1571 = vmatprep.subr.mxu0 %v1314_v39  ;;  %v861_v61 = vld [vmem:[%s2299_s6 + $0x10] sm:$0xff] }
 0x109   : > { %1445 = vmatpush3.msra.mxu1 %v1280_v62  ;;  %1572 = vmatpush3.msra.mxu0 %v1314_v39  ;;  %v860_v62 = vld [vmem:[%s2299_s6 + $0x8] sm:$0xff]  ;;  %v1327_v39 = vld [vmem:[%s2299_s6 + $0x140] sm:$0xff] }
 0x10a   : > { %1446 = vmatprep.subr.mxu1 %v1295_v63  ;;  %1573 = vmatprep.subr.mxu0 %v1313_v40  ;;  %v859_v63 = vld [vmem:[%s2299_s6] sm:$0xff] }
 0x10b   : > { %1447 = vmatpush3.msra.mxu1 %v1279_v0  ;;  %1574 = vmatpush3.msra.mxu0 %v1313_v40  ;;  %v1326_v40 = vld [vmem:[%s2299_s6 + $0x138] sm:$0xff] }
 0x10c   : > { %1448 = vmatprep.subr.mxu1 %v1294_v1  ;;  %1575 = vmatprep.subr.mxu0 %v1312_v41 }
 0x10d   : > { %1449 = vmatpush3.msra.mxu1 %v1278_v2  ;;  %1576 = vmatpush3.msra.mxu0 %v1312_v41  ;;  %v1325_v41 = vld [vmem:[%s2299_s6 + $0x130] sm:$0xff] }
 0x10e   : > { %1450 = vmatprep.subr.mxu1 %v1293_v3  ;;  %1577 = vmatprep.subr.mxu0 %v1311_v42 }
 0x10f   : > { %1451 = vmatpush3.msra.mxu1 %v1277_v7  ;;  %1578 = vmatpush3.msra.mxu0 %v1311_v42  ;;  %v1324_v42 = vld [vmem:[%s2299_s6 + $0x128] sm:$0xff] }
 0x110   : > { %1452 = vmatprep.subr.mxu1 %v1292_v10  ;;  %1579 = vmatprep.subr.mxu0 %v1310_v43 }
 0x111   : > { %1453 = vmatpush3.msra.mxu1 %v1276_v6  ;;  %1580 = vmatpush3.msra.mxu0 %v1310_v43  ;;  %v1323_v43 = vld [vmem:[%s2299_s6 + $0x120] sm:$0xff] }
 0x112   : > { %1454 = vmatprep.subr.mxu1 %v1291_v5  ;;  %1581 = vmatprep.subr.mxu0 %v1309_v45 }
 0x113   : > { %1455 = vmatpush3.msra.mxu1 %v1275_v8  ;;  %1582 = vmatpush3.msra.mxu0 %v1309_v45  ;;  %v1321_v45 = vld [vmem:[%s2299_s6 + $0x110] sm:$0xff] }
 0x114   : > { %1456 = vmatprep.subr.mxu1 %v1290_v9  ;;  %1583 = vmatprep.subr.mxu0 %v1308_v47 }
 0x115   : > { %1457 = vmatpush3.msra.mxu1 %v1274_v11  ;;  %1584 = vmatpush3.msra.mxu0 %v1308_v47  ;;  %v1319_v47 = vld [vmem:[%s2299_s6 + $0x100] sm:$0xff] }
 0x116   : > { %1458 = vmatprep.subr.mxu1 %v1289_v12  ;;  %1585 = vmatprep.subr.mxu0 %v1307_v49 }
 0x117   : > { %1459 = vmatpush3.msra.mxu1 %v1273_v13  ;;  %1586 = vmatpush3.msra.mxu0 %v1307_v49 }
 0x118   : > { %1460 = vmatprep.subr.mxu1 %v1288_v14  ;;  %1587 = vmatprep.subr.mxu0 %v1306_v51 }
 0x119   : > { %1461 = vmatpush3.msra.mxu1 %v1272_v15  ;;  %1588 = vmatpush3.msra.mxu0 %v1306_v51 }
 0x11a   : > { %1462 = vmatprep.subr.mxu1 %v1287_v17  ;;  %1589 = vmatprep.subr.mxu0 %v1305_v53  ;;  %v1301_v17 = vld [vmem:[%s2298_s5] ss:$0 sm:$0xff] }
 0x11b   : > { %1463 = vmatpush3.msra.mxu1 %v1271_v18  ;;  %1590 = vmatpush3.msra.mxu0 %v1305_v53 }
 0x11c   : > { %1464 = vmatprep.subr.mxu1 %v1286_v19  ;;  %1591 = vmatprep.subr.mxu0 %v1304_v55 }
 0x11d   : > { %1465 = vmatpush3.msra.mxu1 %v1270_v23  ;;  %1592 = vmatpush3.msra.mxu0 %v1304_v55  ;;  %v1335_v55 = vld [vmem:[%s2300_s7] ss:$0 sm:$0xff] }
 0x11e   : > { %1466 = vmatprep.subr.mxu1 %v1285_v25  ;;  %1593 = vmatprep.subr.mxu0 %v1303_v57 }
 0x11f   : > { %1467 = vmatpush3.msra.mxu1 %v1269_v26  ;;  %1594 = vmatpush3.msra.mxu0 %v1303_v57 }
 0x120   : > { %827 = vmatmul.mubr.f32.vlgmr.msra.gmra.mxu1 %v750_v4  ;;  %1598 = vmatprep.subr.mxu1 %v874_v32 }
 0x121   : > { %831 = vmatprep.mubr.f32.mxu1 %v757_v29  ;;  %1599 = vmatpush3.msra.mxu1 %v874_v32 }
 0x122   : > { %1600 = vmatprep.subr.mxu1 %v873_v33  ;;  %1633 = vmatprep.subr.mxu0 %v1334_v59 }
 0x123   : > { %1601 = vmatpush3.msra.mxu1 %v873_v33  ;;  %v1330_v33 = vld [vmem:[%s2299_s6 + $0x158] sm:$0xff] }
 0x124   : > { %832 = vmatmul.mubr.f32.gmra.mxu1 %v755_v30  ;;  %1602 = vmatprep.subr.mxu1 %v872_v36  ;;  %v1333_v30 = vld [vmem:[%s2299_s6 + $0x170] sm:$0xff] }
 0x125   : > { %1603 = vmatpush3.msra.mxu1 %v872_v36 }
 0x126   : > { %1604 = vmatprep.subr.mxu1 %v871_v38 }
 0x127   : > { %1605 = vmatpush3.msra.mxu1 %v871_v38  ;;  %v1328_v38 = vld [vmem:[%s2299_s6 + $0x148] sm:$0xff] }
 0x128   : > { %1606 = vmatprep.subr.mxu1 %v870_v44 }
 0x129   : > { %1607 = vmatpush3.msra.mxu1 %v870_v44  ;;  %v1322_v44 = vld [vmem:[%s2299_s6 + $0x118] sm:$0xff] }
 0x12a   : > { %1608 = vmatprep.subr.mxu1 %v869_v46 }
 0x12b   : > { %1609 = vmatpush3.msra.mxu1 %v869_v46  ;;  %v1320_v46 = vld [vmem:[%s2299_s6 + $0x108] sm:$0xff] }
 0x12c   : > { %1610 = vmatprep.subr.mxu1 %v868_v48 }
 0x12d   : > { %1611 = vmatpush3.msra.mxu1 %v868_v48 }
 0x12e   : > { %1612 = vmatprep.subr.mxu1 %v867_v50 }
 0x12f   : > { %1613 = vmatpush3.msra.mxu1 %v867_v50 }
 0x130   : > { %1614 = vmatprep.subr.mxu1 %v866_v52 }
 0x131   : > { %1615 = vmatpush3.msra.mxu1 %v866_v52 }
 0x132   : > { %1616 = vmatprep.subr.mxu1 %v865_v54 }
 0x133   : > { %1617 = vmatpush3.msra.mxu1 %v865_v54 }
 0x134   : > { %1618 = vmatprep.subr.mxu1 %v864_v56 }
 0x135   : > { %1619 = vmatpush3.msra.mxu1 %v864_v56 }
 0x136   : > { %1620 = vmatprep.subr.mxu1 %v863_v58 }
 0x137   : > { %1621 = vmatpush3.msra.mxu1 %v863_v58  ;;  %v1336_v58 = vld [vmem:[%s2300_s7 + $0x1] ss:$0 sm:$0xff] }
 0x138   : > { %1622 = vmatprep.subr.mxu1 %v862_v60 }
 0x139   : > { %1623 = vmatpush3.msra.mxu1 %v862_v60 }
 0x13a   : > { %1624 = vmatprep.subr.mxu1 %v861_v61 }
 0x13b   : > { %1625 = vmatpush3.msra.mxu1 %v861_v61 }
 0x13c   : > { %1626 = vmatprep.subr.mxu1 %v860_v62 }
 0x13d   : > { %1627 = vmatpush3.msra.mxu1 %v860_v62 }
 0x13e   : > { %1628 = vmatprep.subr.mxu1 %v859_v63 }
 0x13f   : > { %1629 = vmatpush3.msra.mxu1 %v859_v63 }
 0x1bc   : > { %v1430_v1 = vpop.f32.mrf.mxu0 }
 0x1be   : > { %v1431_v3 = vpop.f32.mrf.mxu0 }
 0x1bf   : > { %v1432_v8 = vadd.f32 %v1431_v3, %v1430_v1 }
 0x1c0   : > { %v1392_v0 = vpop.f32.mrf.mxu1  ;;  %v1433_v10 = vpop.f32.mrf.mxu0 }
 0x1c2   : > { %v1393_v2 = vpop.f32.mrf.mxu1  ;;  %v1434_v9 = vpop.f32.mrf.mxu0 }
 0x1c3   : > { %v1394_v5 = vadd.f32 %v1393_v2, %v1392_v0  ;;  %v1435_v15 = vadd.f32 %v1434_v9, %v1433_v10 }
 0x1c4   : > { %v1395_v7 = vpop.f32.mrf.mxu1 }
 0x1c5   : > { %v698_v13 = vadd.f32 %v1432_v8, %v1394_v5 }
 0x1c6   : > { %v1396_v6 = vpop.f32.mrf.mxu1 }
 0x1c7   : > { %v1397_v14 = vadd.f32 %v1396_v6, %v1395_v7 }
 0x1c9   : > { %v703_v22 = vadd.f32 %v1435_v15, %v1397_v14 }
 0x1e0   : > { %v1468_v11 = vpop.f32.mrf.mxu1 }
 0x1e2   : > { %v1469_v12 = vpop.f32.mrf.mxu1 }
 0x1e3   : > { %v1470_v16 = vadd.f32 %v1469_v12, %v1468_v11 }
 0x1e4   : > { %v1471_v18 = vpop.f32.mrf.mxu1 }
 0x1e5   : > { %v837_v19 = vadd.f32 %v1470_v16, %v698_v13 }
 0x1e6   : > { %v1472_v21 = vpop.f32.mrf.mxu1 }
 0x1e7   : > { %v844_v23 = vmul.f32 %v1301_v17, %v837_v19  ;;  %v1473_v24 = vadd.f32 %v1472_v21, %v1471_v18 }
 0x1e9   : > { %v851_v25 = vadd.f32 %v1302_v20, %v844_v23  ;;  %v838_v26 = vadd.f32 %v1473_v24, %v703_v22 }
 0x1eb   : > { %v853_v27 = vmax.f32 %v851_v25, 0.0  ;;  %v845_v4 = vmul.f32 %v1301_v17, %v838_v26 }
 0x1ed   : > { %855 = vst [vmem:[#allocation3 + $0x1] sm:$0xff] %v853_v27  ;;  %v852_v28 = vadd.f32 %v1302_v20, %v845_v4  ;;  %1595 = vmatprep.mubr.f32.mxu0 %v853_v27 }
 0x1ef   : > { %v854_v29 = vmax.f32 %v852_v28, 0.0 }
 0x1f1   : > { %856 = vst [vmem:[#allocation3 + $0x9] sm:$0xff] %v854_v29  ;;  %1596 = vmatmul.mubr.f32.vlgmr.msra.gmra.mxu0 %v854_v29 }
 0x1f2   : > { %1634 = vmatpush3.msra.mxu0 %v1334_v59 }
 0x1f3   : > { %1635 = vmatprep.subr.mxu0 %v1333_v30 }
 0x1f4   : > { %v857_v32 = vld [vmem:[#allocation3] sm:$0xff]  ;;  %1636 = vmatpush3.msra.mxu0 %v1333_v30 }
 0x1f5   : > { %1630 = vmatprep.mubr.f32.mxu1 %v857_v32  ;;  %1637 = vmatprep.subr.mxu0 %v1332_v31 }
 0x1f6   : > { %1638 = vmatpush3.msra.mxu0 %v1332_v31 }
 0x1f7   : > { %1639 = vmatprep.subr.mxu0 %v1331_v34 }
 0x1f8   : > { %v858_v35 = vld [vmem:[#allocation3 + $0x8] sm:$0xff]  ;;  %1640 = vmatpush3.msra.mxu0 %v1331_v34 }
 0x1f9   : > { %v1044_v36 = vld [vmem:[#allocation3 + $0x2] sm:$0xff]  ;;  %1631 = vmatmul.mubr.f32.vlgmr.msra.gmra.mxu1 %v858_v35  ;;  %1641 = vmatprep.subr.mxu0 %v1330_v33  ;;  %v1045_v48 = vld [vmem:[#allocation3 + $0xa] sm:$0xff] }
 0x1fa   : > { %1665 = vmatprep.mubr.f32.mxu0 %v1044_v36  ;;  %1642 = vmatpush3.msra.mxu0 %v1330_v33 }
 0x1fb   : > { %1643 = vmatprep.subr.mxu0 %v1329_v37 }
 0x1fc   : > { %1644 = vmatpush3.msra.mxu0 %v1329_v37 }
 0x1fd   : > { %1645 = vmatprep.subr.mxu0 %v1328_v38 }
 0x1fe   : > { %1646 = vmatpush3.msra.mxu0 %v1328_v38 }
 0x1ff   : > { %1647 = vmatprep.subr.mxu0 %v1327_v39 }
 0x200   : > { %1648 = vmatpush3.msra.mxu0 %v1327_v39 }
 0x201   : > { %1649 = vmatprep.subr.mxu0 %v1326_v40 }
 0x202   : > { %1650 = vmatpush3.msra.mxu0 %v1326_v40 }
 0x203   : > { %1651 = vmatprep.subr.mxu0 %v1325_v41 }
 0x204   : > { %1652 = vmatpush3.msra.mxu0 %v1325_v41 }
 0x205   : > { %1653 = vmatprep.subr.mxu0 %v1324_v42 }
 0x206   : > { %1654 = vmatpush3.msra.mxu0 %v1324_v42 }
 0x207   : > { %1655 = vmatprep.subr.mxu0 %v1323_v43 }
 0x208   : > { %1656 = vmatpush3.msra.mxu0 %v1323_v43 }
 0x209   : > { %1657 = vmatprep.subr.mxu0 %v1322_v44 }
 0x20a   : > { %1658 = vmatpush3.msra.mxu0 %v1322_v44 }
 0x20b   : > { %1659 = vmatprep.subr.mxu0 %v1321_v45 }
 0x20c   : > { %1660 = vmatpush3.msra.mxu0 %v1321_v45 }
 0x20d   : > { %1661 = vmatprep.subr.mxu0 %v1320_v46 }
 0x20e   : > { %1662 = vmatpush3.msra.mxu0 %v1320_v46 }
 0x20f   : > { %1663 = vmatprep.subr.mxu0 %v1319_v47 }
 0x210   : > { %1664 = vmatpush3.msra.mxu0 %v1319_v47 }
 0x211   : > { %1666 = vmatmul.mubr.f32.vlgmr.msra.gmra.mxu0 %v1045_v48 }
 0x2b1   : > { %v1597_v49 = vpop.f32.mrf.mxu0 }
 0x2b3   : > { %v960_v51 = vpop.f32.mrf.mxu0 }
 0x2b9   : > { %v1632_v50 = vpop.f32.mrf.mxu1 }
 0x2ba   : > { %v1041_v53 = vadd.f32 %v1632_v50, %v1597_v49 }
 0x2bb   : > { %v1035_v52 = vpop.f32.mrf.mxu1 }
 0x2bc   : > { %v1036_v56 = vadd.f32 %v1035_v52, %v960_v51 }
 0x2d1   : > { %v1667_v54 = vpop.f32.mrf.mxu0 }
 0x2d2   : > { %v1139_v57 = vadd.f32 %v1667_v54, %v1041_v53 }
 0x2d3   : > { %v1129_v59 = vpop.f32.mrf.mxu0 }
 0x2d4   : > { %v1146_v60 = vmul.f32 %v1335_v55, %v1139_v57  ;;  %v1138_v61 = vadd.f32 %v1129_v59, %v1036_v56 }
 0x2d6   : > { %v1153_v62 = vadd.f32 %v1336_v58, %v1146_v60  ;;  %v1145_v63 = vmul.f32 %v1335_v55, %v1138_v61 }
 0x2d8   : > { %v1155_v0 = vmax.f32 %v1153_v62, 0.0  ;;  %v1152_v1 = vadd.f32 %v1336_v58, %v1145_v63 }
 0x2da   : > { %1157 = vst [vmem:[%s325_s29 + $0x8] sm:$0xff] %v1155_v0  ;;  %v1154_v2 = vmax.f32 %v1152_v1, 0.0 }
 0x2dc   : > { %1156 = vst [vmem:[%s325_s29] sm:$0xff] %v1154_v2 }
 0x2dd PF: > { %s18_s27 = sadd.s32 1, %s1683_s27  }
 0x2de   : > { %p15_p4 = scmp.ge.s32.totalorder %s18_s27, 4  }
 0x2e0   :  { %17 = sbr.rel (!%p15_p4) target bundleno = 1 (0x1), region = 90 }

</bundles_post_ra>
